<compile_context>
chip_gen: v7x
topology: tpu7x:2x2x1
jax: 0.10.0
libtpu: 0.0.40
codegen_flags: <defaults>
</compile_context>

<pallas_src>
import jax
import jax.numpy as jnp
from jax.experimental import pallas as pl
from jax.experimental.pallas import tpu as pltpu


def _vmem_budget_bytes():
    """Per-generation scoped-VMEM budget (v7x: 64 MiB physical, v5e/v6e: 128)."""
    cap = 128 * 1024 * 1024
    try:
        cap = int(pltpu.get_tpu_info().vmem_capacity_bytes)
    except Exception:
        pass
    if cap <= 0:
        cap = 128 * 1024 * 1024
    return int(min(cap * 3 // 4, 64 * 1024 * 1024))


# ----------------------------------------------------------------------------
# Pallas kernel 1: streamed patch statistics (X^T X and column sums) on the MXU.
#   grid = (n_split, per_split): leading axis "parallel" (2-way TensorCore split
#   on v7x), inner axis "arbitrary" row-tile reduction.  The per-split partial
#   statistics accumulate directly into the resident output blocks; the tiny
#   DxD finalize (diag-block fold, mean correction, 1/(M-1) scale) runs in JAX.
# ----------------------------------------------------------------------------
def _cov_stats_kernel(x_ref, xtx_ref, sum_ref):
    i = pl.program_id(1)
    x = x_ref[...]                                                # (tm, kD) f32
    xtx = jax.lax.dot_general(
        x, x, dimension_numbers=(((0,), (0,)), ((), ())),
        preferred_element_type=jnp.float32)                       # (kD, kD)
    csum = jnp.sum(x, axis=0, keepdims=True)                      # (1, kD)

    @pl.when(i == 0)
    def _init():
        xtx_ref[0] = xtx
        sum_ref[0] = csum

    @pl.when(i > 0)
    def _acc():
        xtx_ref[0] += xtx
        sum_ref[0] += csum


def compute_patch_cov(all_patches):
    m_total, d = all_patches.shape
    budget = _vmem_budget_bytes()

    # Lane-pack small D: view (M, D) as (M/k, k*D) with k*D == 128 (a free
    # reshape in HBM).  The off-diagonal DxD blocks of Y^T Y are discarded in
    # the finalize; diagonal blocks sum to X^T X exactly.
    k = 1
    if d < 128 and 128 % d == 0 and m_total % (128 // d) == 0:
        k = 128 // d
    kd = k * d
    m_rows = m_total // k
    y = all_patches.reshape(m_rows, kd)

    # D-aware row tile: ~8 MiB streamed input block (double-buffered by Pallas).
    target_bytes = min(8 * 1024 * 1024, budget // 4)
    tm = max(8, (target_bytes // (4 * kd)) // 8 * 8)
    if tm >= m_rows:
        tm = m_rows
        n_tiles = 1
    else:
        n_tiles = pl.cdiv(m_rows, tm)

    # Split the row loop across TensorCores (2x on v7x, no-op on 1-TC chips).
    n_split = 2 if n_tiles >= 2 else 1
    per_split = pl.cdiv(n_tiles, n_split)
    n_tiles = n_split * per_split
    m_pad = tm * n_tiles
    if m_pad != m_rows:                   # zero rows add nothing to the sums
        y = jnp.pad(y, ((0, m_pad - m_rows), (0, 0)))

    partial_xtx, partial_sum = pl.pallas_call(
        _cov_stats_kernel,
        out_shape=(jax.ShapeDtypeStruct((n_split, kd, kd), jnp.float32),
                   jax.ShapeDtypeStruct((n_split, 1, kd), jnp.float32)),
        grid_spec=pltpu.PrefetchScalarGridSpec(
            num_scalar_prefetch=0,
            grid=(n_split, per_split),
            in_specs=[pl.BlockSpec((tm, kd),
                                   lambda s, i: (s * per_split + i, 0))],
            out_specs=[pl.BlockSpec((1, kd, kd), lambda s, i: (s, 0, 0)),
                       pl.BlockSpec((1, 1, kd), lambda s, i: (s, 0, 0))],
        ),
        compiler_params=pltpu.CompilerParams(
            dimension_semantics=("parallel", "arbitrary"),
            vmem_limit_bytes=budget),
    )(y)

    # ---- tiny DxD finalize in JAX ----
    xtx_kd = jnp.sum(partial_xtx, axis=0)                         # (kD, kD)
    colsum_kd = jnp.sum(partial_sum, axis=0)[0]                   # (kD,)
    if k > 1:
        xtx = sum(xtx_kd[a * d:(a + 1) * d, a * d:(a + 1) * d] for a in range(k))
        colsum = jnp.sum(colsum_kd.reshape(k, d), axis=0)
    else:
        xtx, colsum = xtx_kd, colsum_kd
    m_f = jnp.float32(m_total)
    mean = colsum / m_f
    # Single-pass correction (X^T X - M*mean*mean^T) == centered^T centered;
    # analytically identical to the torch two-pass reference (fp-only delta).
    cov = (xtx - m_f * jnp.outer(mean, mean)) / (m_f - 1.0 + 1e-6)
    return cov


# ----------------------------------------------------------------------------
# Pallas kernel 2: PCA-noise synthesis.
#   grid = (B, N//TN); batch axis "parallel" (megacore), tile axis "arbitrary"
#   so the per-batch sigma-scaled bf16 projection cached in VMEM scratch is
#   only rebuilt at t == 0.  sigma arrives via scalar prefetch (SMEM).
# ----------------------------------------------------------------------------
def _noise_kernel(sigma_ref, x_ref, coeff_ref, vecs_ref,
                  noisy_ref, energy_ref, proj_ref):
    b = pl.program_id(0)
    t = pl.program_id(1)

    @pl.when(t == 0)
    def _build_proj():
        # sigma * (sqrt(eigvals)*mask folded into V^T); bf16 MXU operand.
        proj_ref[...] = (vecs_ref[...] * sigma_ref[b]).astype(jnp.bfloat16)

    coeff = coeff_ref[0]                                          # (TN, D) bf16
    pca_noise = jnp.dot(coeff, proj_ref[...],
                        preferred_element_type=jnp.float32)       # (TN, D) f32
    noisy_ref[0] = x_ref[0] + pca_noise

    # Lane-dense noise energy (N along lanes) via an MXU contraction.
    # TODO(synk): verify (bundle dump) the rhs-transposed dot_general does not
    # materialize an XLU transpose of `sq`; if it does, switch to jnp.sum +
    # one small per-tile transpose.
    sq = pca_noise * pca_noise
    d = sq.shape[-1]
    ones = jnp.ones((1, d), dtype=jnp.float32)
    energy_ref[0] = jax.lax.dot_general(
        ones, sq, dimension_numbers=(((1,), (1,)), ((), ())),
        preferred_element_type=jnp.float32)                       # (1, TN)


def _pick_n_tile(n, d, budget):
    """Patch tile from the VMEM budget: ~32 B of working set per (row, feature)
    element (f32 x/noisy double-buffered, bf16 coeff double-buffered, f32
    temporaries) plus the two DxD operands.  Returns (tile, padded_N)."""
    fixed = 12 * d * d + (1 << 20)
    avail = max(budget - fixed, 1 << 20)
    tn_max = max(128, avail // (32 * d))
    if n <= tn_max:
        return n, n
    t = (tn_max // 128) * 128
    for tn in range(t, 127, -128):          # prefer an exact divisor of N
        if n % tn == 0:
            return tn, n
    return t, pl.cdiv(n, t) * t             # zero-padded tail tile otherwise


def apply_pca_noise(x_patches, key, sigma, vecsT_scaled):
    B, N, D = x_patches.shape
    budget = _vmem_budget_bytes()
    tn, n_pad = _pick_n_tile(N, D, budget)
    if n_pad != N:
        x_patches = jnp.pad(x_patches, ((0, 0), (0, n_pad - N), (0, 0)))
    n_tiles = n_pad // tn

    # Gaussian coefficients generated directly in bf16 (half the HBM read of an
    # f32 coeff tensor, native-rate MXU operand).  Distributionally identical
    # to torch.randn because invalid eigen-directions are zeroed in vecsT_scaled.
    coeff = jax.random.normal(key, (B, n_pad, D), dtype=jnp.bfloat16)

    grid_spec = pltpu.PrefetchScalarGridSpec(
        num_scalar_prefetch=1,                    # sigma (B,) f32 -> SMEM
        grid=(B, n_tiles),
        in_specs=[
            pl.BlockSpec((1, tn, D), lambda b, t, sig: (b, t, 0)),   # x patches
            pl.BlockSpec((1, tn, D), lambda b, t, sig: (b, t, 0)),   # coeff bf16
            pl.BlockSpec((D, D),     lambda b, t, sig: (0, 0)),      # scaled V^T
        ],
        out_specs=[
            pl.BlockSpec((1, tn, D), lambda b, t, sig: (b, t, 0)),   # noisy
            pl.BlockSpec((1, 1, tn), lambda b, t, sig: (b, 0, t)),   # energy
        ],
        scratch_shapes=[pltpu.VMEM((D, D), jnp.bfloat16)],           # sigma*proj
    )
    noisy, energy = pl.pallas_call(
        _noise_kernel,
        grid_spec=grid_spec,
        out_shape=(jax.ShapeDtypeStruct((B, n_pad, D), jnp.float32),
                   jax.ShapeDtypeStruct((B, 1, n_pad), jnp.float32)),
        compiler_params=pltpu.CompilerParams(
            dimension_semantics=("parallel", "arbitrary"),
            vmem_limit_bytes=budget),
    )(sigma, x_patches, coeff, vecsT_scaled)
    return noisy[:, :N, :], energy[:, 0, :N]


# ----------------------------------------------------------------------------
# Forward pass (matches MultiScaleSVDPatchPCANoise.forward, training mode)
# ----------------------------------------------------------------------------
def multi_scale_svd_patch_pca_noise(x, key, *, patch_size=4, noise_scale=1.5,
                                    steps=40, training=True):
    if not training:
        return x, None

    B, C, H, W = x.shape
    p = patch_size
    assert H % p == 0 and W % p == 0, \
        "Image dimensions must be divisible by patch size"
    Hp, Wp = H // p, W // p
    N = Hp * Wp
    D = C * p * p

    # TODO(synk): fuse patchify/unpatchify into the Pallas kernels (grid over
    # (B, Hp) with in-kernel (C,p,p)<->(D,) rearrangement, NCHW-direct output)
    # to remove these two full-tensor XLA transposes — the largest remaining
    # HBM cost for this pipeline.
    x = x.astype(jnp.float32)
    x_patches = (x.reshape(B, C, Hp, p, Wp, p)
                   .transpose(0, 2, 4, 1, 3, 5)
                   .reshape(B, N, D))
    all_patches = x_patches.reshape(B * N, D)

    # --- covariance of (implicitly centered) patches: Pallas streamed stats ---
    cov = compute_patch_cov(all_patches)

    # --- eigendecomposition of the covariance (== SVD of centered patches) ---
    # TODO(synk): torch.linalg.svd / eigh has no Pallas equivalent; done with
    # jnp.linalg.eigh in plain JAX on the small DxD covariance.
    eig_vals, eig_vecs = jnp.linalg.eigh(cov)
    order = jnp.argsort(-eig_vals)                      # descending, as in torch
    eig_vals = eig_vals[order]
    eig_vecs = eig_vecs[:, order]
    # data-dependent truncation (eig_vals > 1e-6, same threshold as torch)
    # replaced by static masking: invalid eigen-directions contribute zero noise.
    valid_mask = (eig_vals > 1e-6).astype(jnp.float32)
    comp_scale = jnp.sqrt(jnp.maximum(eig_vals, 0.0)) * valid_mask       # (D,)
    vecsT_scaled = comp_scale[:, None] * eig_vecs.T                      # (D, D)

    # --- per-batch sigma (scalar-prefetched) ---
    k_idx, k_coeff = jax.random.split(key)
    sigmas = jnp.linspace(0.002, noise_scale, steps).astype(jnp.float32)
    # matches torch.randint(0, steps - 1, ...) (exclusive high in both APIs)
    indices = jax.random.randint(k_idx, (B,), 0, steps - 1)
    sigma = sigmas[indices]                                              # (B,)

    # --- synthesize noise, add to patches, per-patch noise energy (Pallas) ---
    noisy_patches, energy = apply_pca_noise(x_patches, k_coeff, sigma,
                                            vecsT_scaled)

    patch_weights = energy / jnp.max(energy)                             # (B, N)

    # --- un-patchify back to NCHW (glue) ---
    noisy_image = (noisy_patches.reshape(B, Hp, Wp, C, p, p)
                                .transpose(0, 3, 1, 4, 2, 5)
                                .reshape(B, C, H, W))
    return noisy_image, patch_weights


if __name__ == "__main__":
    key = jax.random.PRNGKey(0)
    kx, kn = jax.random.split(key)
    x = jax.random.normal(kx, (2, 4, 16, 16), dtype=jnp.float32)   # NCHW

    noisy_image, patch_weights = multi_scale_svd_patch_pca_noise(
        x, kn, patch_size=4, noise_scale=1.5, steps=40, training=True)

    noisy_image = jax.block_until_ready(noisy_image)
    patch_weights = jax.block_until_ready(patch_weights)

    assert noisy_image.shape == x.shape
    assert patch_weights.shape == (2, 16)
    assert bool(jnp.all(jnp.isfinite(noisy_image)))
    assert bool(jnp.all(jnp.isfinite(patch_weights)))
    print("KERNEL_OK")
</pallas_src>

<mosaic_0001>
module attributes {stable_mosaic.version = 11 : i64} {
  func.func @_cov_stats_kernel(%arg0: i32, %arg1: i32, %arg2: memref<16x128xf32, #tpu.memory_space<vmem>>, %arg3: memref<1x128x128xf32, #tpu.memory_space<vmem>>, %arg4: memref<1x1x128xf32, #tpu.memory_space<vmem>>) attributes {dimension_semantics = [#tpu.dimension_semantics<parallel>, #tpu.dimension_semantics<arbitrary>], iteration_bounds = array<i64: 1, 1>, scalar_prefetch = 0 : i64, scratch_operands = 0 : i64, tpu.core_type = #tpu.core_type<tc>, window_params = [{transform_indices = @transform_0, window_bounds = array<i64: 16, 128>}, {transform_indices = @transform_1, window_bounds = array<i64: 1, 128, 128>}, {transform_indices = @transform_2, window_bounds = array<i64: 1, 1, 128>}]} {
    %c0 = arith.constant 0 : index
    %c0_0 = arith.constant 0 : index
    %0 = vector.load %arg2[%c0, %c0_0] : memref<16x128xf32, #tpu.memory_space<vmem>>, vector<16x128xf32>
    %cst = arith.constant dense<0.000000e+00> : vector<128x128xf32>
    %1 = tpu.matmul %0, %0, %cst {dimension_numbers = #tpu.dot_dimension_numbers<[0], [0], [1], [1], [0, 1, 1, 1], [], []>} : vector<16x128xf32>, vector<16x128xf32>, vector<128x128xf32> -> vector<128x128xf32>
    %cst_1 = arith.constant dense<0.000000e+00> : vector<128xf32>
    %2 = vector.multi_reduction <add>, %0, %cst_1 [0] : vector<16x128xf32> to vector<128xf32>
    %3 = vector.shape_cast %2 : vector<128xf32> to vector<1x128xf32>
    %c0_i32 = arith.constant 0 : i32
    %4 = arith.cmpi eq, %arg1, %c0_i32 : i32
    %5 = arith.extui %4 : i1 to i32
    %c0_i32_2 = arith.constant 0 : i32
    %6 = arith.cmpi ne, %5, %c0_i32_2 : i32
    scf.if %6 {
      %c0_5 = arith.constant 0 : index
      %c0_6 = arith.constant 0 : index
      %c0_7 = arith.constant 0 : index
      %10 = vector.load %arg3[%c0_5, %c0_6, %c0_7] : memref<1x128x128xf32, #tpu.memory_space<vmem>>, vector<1x128x128xf32>
      %11 = vector.shape_cast %10 : vector<1x128x128xf32> to vector<128x128xf32>
      %12 = vector.shape_cast %1 : vector<128x128xf32> to vector<1x128x128xf32>
      tpu.vector_store %arg3[%c0_5, %c0_6, %c0_7], %12 {strides = array<i32>} : memref<1x128x128xf32, #tpu.memory_space<vmem>>, vector<1x128x128xf32>,
      %c0_8 = arith.constant 0 : index
      %c0_9 = arith.constant 0 : index
      %c0_10 = arith.constant 0 : index
      %13 = vector.load %arg4[%c0_8, %c0_9, %c0_10] : memref<1x1x128xf32, #tpu.memory_space<vmem>>, vector<1x1x128xf32>
      %14 = vector.shape_cast %13 : vector<1x1x128xf32> to vector<1x128xf32>
      %15 = vector.shape_cast %3 : vector<1x128xf32> to vector<1x1x128xf32>
      tpu.vector_store %arg4[%c0_8, %c0_9, %c0_10], %15 {strides = array<i32>} : memref<1x1x128xf32, #tpu.memory_space<vmem>>, vector<1x1x128xf32>,
    } else {
    }
    %c0_i32_3 = arith.constant 0 : i32
    %7 = arith.cmpi sgt, %arg1, %c0_i32_3 : i32
    %8 = arith.extui %7 : i1 to i32
    %c0_i32_4 = arith.constant 0 : i32
    %9 = arith.cmpi ne, %8, %c0_i32_4 : i32
    scf.if %9 {
      %c0_5 = arith.constant 0 : index
      %c0_6 = arith.constant 0 : index
      %c0_7 = arith.constant 0 : index
      %10 = vector.load %arg3[%c0_5, %c0_6, %c0_7] : memref<1x128x128xf32, #tpu.memory_space<vmem>>, vector<1x128x128xf32>
      %11 = vector.shape_cast %10 : vector<1x128x128xf32> to vector<128x128xf32>
      %12 = arith.addf %11, %1 : vector<128x128xf32>
      %c0_8 = arith.constant 0 : index
      %c0_9 = arith.constant 0 : index
      %c0_10 = arith.constant 0 : index
      %13 = vector.load %arg3[%c0_8, %c0_9, %c0_10] : memref<1x128x128xf32, #tpu.memory_space<vmem>>, vector<1x128x128xf32>
      %14 = vector.shape_cast %13 : vector<1x128x128xf32> to vector<128x128xf32>
      %15 = vector.shape_cast %12 : vector<128x128xf32> to vector<1x128x128xf32>
      tpu.vector_store %arg3[%c0_8, %c0_9, %c0_10], %15 {strides = array<i32>} : memref<1x128x128xf32, #tpu.memory_space<vmem>>, vector<1x128x128xf32>,
      %c0_11 = arith.constant 0 : index
      %c0_12 = arith.constant 0 : index
      %c0_13 = arith.constant 0 : index
      %16 = vector.load %arg4[%c0_11, %c0_12, %c0_13] : memref<1x1x128xf32, #tpu.memory_space<vmem>>, vector<1x1x128xf32>
      %17 = vector.shape_cast %16 : vector<1x1x128xf32> to vector<1x128xf32>
      %18 = arith.addf %17, %3 : vector<1x128xf32>
      %c0_14 = arith.constant 0 : index
      %c0_15 = arith.constant 0 : index
      %c0_16 = arith.constant 0 : index
      %19 = vector.load %arg4[%c0_14, %c0_15, %c0_16] : memref<1x1x128xf32, #tpu.memory_space<vmem>>, vector<1x1x128xf32>
      %20 = vector.shape_cast %19 : vector<1x1x128xf32> to vector<1x128xf32>
      %21 = vector.shape_cast %18 : vector<1x128xf32> to vector<1x1x128xf32>
      tpu.vector_store %arg4[%c0_14, %c0_15, %c0_16], %21 {strides = array<i32>} : memref<1x1x128xf32, #tpu.memory_space<vmem>>, vector<1x1x128xf32>,
    } else {
    }
    return
  }
  func.func @transform_0(%arg0: i32, %arg1: i32) -> (i32, i32) {
    %c1_i32 = arith.constant 1 : i32
    %0 = arith.muli %arg0, %c1_i32 : i32
    %1 = arith.addi %0, %arg1 : i32
    %c0_i32 = arith.constant 0 : i32
    %c0_i32_0 = arith.constant 0 : i32
    return %1, %c0_i32 : i32, i32
  }
  func.func @transform_1(%arg0: i32, %arg1: i32) -> (i32, i32, i32) {
    %c0_i32 = arith.constant 0 : i32
    %c0_i32_0 = arith.constant 0 : i32
    %c0_i32_1 = arith.constant 0 : i32
    return %arg0, %c0_i32, %c0_i32_0 : i32, i32, i32
  }
  func.func @transform_2(%arg0: i32, %arg1: i32) -> (i32, i32, i32) {
    %c0_i32 = arith.constant 0 : i32
    %c0_i32_0 = arith.constant 0 : i32
    %c0_i32_1 = arith.constant 0 : i32
    return %arg0, %c0_i32, %c0_i32_0 : i32, i32, i32
  }
}

</mosaic_0001>

<bundles_post_ra>
// kernel: tpu_custom_call.1
= control target key start
LH: loop header
LB: loop body
LE: loop exit
PB: predicated region body
PF: predicated region fallthrough
CT: control target
= control target key end

     0   :  { %8 = vsyncpa [#allocation3], 0  ;;  %s598_s0 = inlined_call_operand.hbm [shape: f32[16,128], index: 0, kind: input, shape index: {}]   ;;  %s599_s1 = inlined_call_operand.hbm [shape: f32[1,128,128], index: 1, kind: output, shape index: {0}]   ;;  %s600_s2 = inlined_call_operand.hbm [shape: f32[1,1,128], index: 2, kind: output, shape index: {1}]  }
   0x1   :  { %9 = vsyncpa [#allocation4], 0 }
   0x2   :  { %10 = vsyncpa [#allocation7], 0  ;;  %s520_s9 = smov [#allocation2]   ;;  %s448_s13 = scalar_lea.hbm %s598_s0, 256 }
   0x3   :  { %s20_s10 = sshll.u32 %s520_s9, 4  ;;  %p449_p0 = scmp.ne.s32.totalorder %s598_s0, %s448_s13  ;;  %s21_s10 = int_to_ptr.vmem [resolvable:$true] %s20_s10 }
   0x4   :  { %p452_p1 = scmp.lt.u32.totalorder %s448_s13, %s598_s0 }
   0x6   :  { %p454_p2 = pnand %p452_p1, %p449_p0 }
   0x8   :  { %457 = shalt.err (!%p454_p2)
}
   0x9   :  { %s458_s18 = scalar_lea.vmem %s21_s10, 256  ;;  %p463_p4 = scmp.lt.s32.totalorder %s21_s10, %s21_s10 }
   0xa   :  { %p459_p3 = scmp.ne.s32.totalorder %s21_s10, %s458_s18  ;;  %p464_p5 = scmp.lt.s32.totalorder %s458_s18, %s458_s18 }
   0xc   :  { %p465_p6 = por %p464_p5, %p463_p4 }
   0xe   :  { %p466_p7 = pnand %p465_p6, %p459_p3 }
  0x10   :  { %469 = shalt.err (!%p466_p7)
}
  0x11   :  { %s521_s19 = smov 128   ;;  %s522_s20 = smov 8  }
  0x12   :  { %26 = dma.hbm_to_vmem [thread:$0]  %s598_s0, 256, %s21_s10, [#allocation3], %s521_s19, %s521_s19, %s522_s20  }
  0x13   :  { %514 = dma.done.wait [#allocation3], 256  }
  0x14   :  { %515 = vsyncadd [#allocation3], 4294967040  ;;  %v32_v0 = vld [vmem:[#allocation2] sm:$0xff]  ;;  %v33_v1 = vld [vmem:[#allocation2 + $0x8] sm:$0xff]  ;;  %vm66_vm0 = vcmask 130048   ;;  %s523_s0 = smov [#allocation6]  }
  0x15   :  { %34 = vxpose.xlu0.b32.start [1/2] (short) %v32_v0, 128  ;;  %v436_v2 = vpack.c.bf16 %v33_v1, %v32_v0  ;;  %v260_v3 = vadd.f32 %v33_v1, %v32_v0  ;;  %s361_s23 = sshll.u32 %s523_s0, 4  ;;  %s362_s23 = int_to_ptr.vmem [resolvable:$true] %s361_s23 }
  0x16   :  { %s470_s24 = scalar_lea.vmem %s362_s23, 16  ;;  %s474_s25 = scalar_lea.vmem %s362_s23, 32 }
  0x17   :  { %437 = vmatprep.subr.bf16.mxu0 %v436_v2  ;;  %440 = vmatprep.subr.bf16.mxu1 %v436_v2  ;;  %v261_v20 = vrot.slane %v260_v3, 4  ;;  %p471_p8 = scmp.ne.s32.totalorder %s362_s23, %s470_s24  ;;  %p475_p9 = scmp.lt.s32.totalorder %s362_s23, %s362_s23 }
  0x18   :  { %439 = vmatpush3.bf16.msra.mxu0 %v436_v2  ;;  %441 = vmatpush3.bf16.msra.mxu1 %v436_v2  ;;  %p476_p10 = scmp.lt.s32.totalorder %s474_s25, %s470_s24 }
  0x19   :  { %35 = vxpose.xlu0.b32.end [2/2] (short) %v33_v1, 128  ;;  %v262_v21 = vadd.f32 %v261_v20, %v260_v3 }
  0x1a   :  { %p477_p11 = por %p476_p10, %p475_p9 }
  0x1b   :  { %v263_v22 = vrot.slane %v262_v21, 2 }
  0x1c   :  { %p478_p12 = pnand %p477_p11, %p471_p8 }
  0x1d   :  { %v264_v23 = vadd.f32 %v263_v22, %v262_v21 }
  0x1f   :  { %v265_v24 = vrot.slane %v264_v23, 1 }
  0x21   :  { %v266_v25 = vadd.f32 %v265_v24, %v264_v23 }
  0x23   :  { %287 = vst [vmem:[#allocation6] sm:$0x1] %v266_v25 }
  0x95   :  { %v50_v4 = vpop.trf.xlu0 }
  0x96   :  { %412 = vmatprep.mubr.msk.f32.mxu0 %vm66_vm0, %v50_v4 }
  0x99   :  { %v51_v5 = vpop.trf.xlu0 }
  0x9a   :  { %413 = vmatmul.mubr.msk.f32.vlgmr.msra.gmra.mrb[0].mxu0 %vm66_vm0, %v51_v5 }
  0x9d   :  { %v52_v6 = vpop.trf.xlu0 }
  0x9e   :  { %415 = vmatprep.mubr.msk.f32.mxu0 %vm66_vm0, %v52_v6 }
  0xa1   :  { %v53_v7 = vpop.trf.xlu0 }
  0xa2   :  { %416 = vmatmul.mubr.msk.f32.gmra.mrb[2].mxu0 %vm66_vm0, %v53_v7 }
  0xa5   :  { %v54_v8 = vpop.trf.xlu0 }
  0xa6   :  { %418 = vmatprep.mubr.msk.f32.mxu0 %vm66_vm0, %v54_v8 }
  0xa9   :  { %v55_v9 = vpop.trf.xlu0 }
  0xaa   :  { %419 = vmatmul.mubr.msk.f32.gmra.mrb[4].mxu0 %vm66_vm0, %v55_v9 }
  0xad   :  { %v56_v10 = vpop.trf.xlu0 }
  0xae   :  { %421 = vmatprep.mubr.msk.f32.mxu0 %vm66_vm0, %v56_v10 }
  0xb1   :  { %v57_v11 = vpop.trf.xlu0 }
  0xb2   :  { %422 = vmatmul.mubr.msk.f32.gmra.mrb[6].mxu0 %vm66_vm0, %v57_v11 }
  0xb5   :  { %v58_v12 = vpop.trf.xlu0 }
  0xb6   :  { %424 = vmatprep.mubr.msk.f32.mxu1 %vm66_vm0, %v58_v12 }
  0xb9   :  { %v59_v13 = vpop.trf.xlu0 }
  0xba   :  { %425 = vmatmul.mubr.msk.f32.vlgmr.msra.gmra.mrb[0].mxu1 %vm66_vm0, %v59_v13 }
  0xbd   :  { %v60_v14 = vpop.trf.xlu0 }
  0xbe   :  { %427 = vmatprep.mubr.msk.f32.mxu1 %vm66_vm0, %v60_v14 }
  0xc1   :  { %v61_v15 = vpop.trf.xlu0 }
  0xc2   :  { %428 = vmatmul.mubr.msk.f32.gmra.mrb[2].mxu1 %vm66_vm0, %v61_v15 }
  0xc5   :  { %v62_v16 = vpop.trf.xlu0 }
  0xc6   :  { %430 = vmatprep.mubr.msk.f32.mxu1 %vm66_vm0, %v62_v16 }
  0xc9   :  { %v63_v17 = vpop.trf.xlu0 }
  0xca   :  { %431 = vmatmul.mubr.msk.f32.gmra.mrb[4].mxu1 %vm66_vm0, %v63_v17 }
  0xcd   :  { %v64_v18 = vpop.trf.xlu0 }
  0xce   :  { %433 = vmatprep.mubr.msk.f32.mxu1 %vm66_vm0, %v64_v18 }
  0xd1   :  { %v65_v19 = vpop.trf.xlu0 }
  0xd2   :  { %434 = vmatmul.mubr.msk.f32.gmra.mrb[6].mxu1 %vm66_vm0, %v65_v19 }
  0xd3   :  { %481 = shalt.err (!%p478_p12)
}
  0xd4   :  { %s482_s28 = scalar_lea.hbm %s600_s2, 16 }
  0xd5   :  { %p483_p13 = scmp.ne.s32.totalorder %s600_s2, %s482_s28  ;;  %p486_p0 = scmp.lt.u32.totalorder %s482_s28, %s600_s2 }
  0xd7   :  { %p488_p1 = pnand %p486_p0, %p483_p13 }
  0xd9   :  { %491 = shalt.err (!%p488_p1)
}
  0xda   :  { %364 = dma.vmem_to_hbm [thread:$0]  %s362_s23, 16, %s600_s2, [#allocation7]  }
  0xdb   :  { %s524_s2 = smov [#allocation5]  }
  0xdc   :  { %s348_s7 = sshll.u32 %s524_s2, 4  ;;  %s349_s7 = int_to_ptr.vmem [resolvable:$true] %s348_s7 }
  0xdd   :  { %s492_s8 = scalar_lea.vmem %s349_s7, 2048  ;;  %p497_p3 = scmp.lt.s32.totalorder %s349_s7, %s349_s7 }
  0xde   :  { %p493_p2 = scmp.ne.s32.totalorder %s349_s7, %s492_s8  ;;  %p498_p4 = scmp.lt.s32.totalorder %s492_s8, %s492_s8 }
  0xe0   :  { %p499_p5 = por %p498_p4, %p497_p3 }
  0xe2   :  { %p500_p6 = pnand %p499_p5, %p493_p2 }
 0x16d   :  { %v414_v26 = vpop.f32.mrb[0].mxu0 }
 0x16e   :  { %272 = vst [vmem:[#allocation5 + $0x8] sm:$0xff] %v414_v26  ;;  %v181_v27 = vpop.f32.mrb[1].mxu0 }
 0x16f   :  { %271 = vst [vmem:[#allocation5] sm:$0xff] %v181_v27 }
 0x175   :  { %v417_v28 = vpop.f32.mrb[2].mxu0 }
 0x176   :  { %274 = vst [vmem:[#allocation5 + $0x18] sm:$0xff] %v417_v28  ;;  %v191_v29 = vpop.f32.mrb[3].mxu0 }
 0x177   :  { %273 = vst [vmem:[#allocation5 + $0x10] sm:$0xff] %v191_v29 }
 0x17d   :  { %v420_v30 = vpop.f32.mrb[4].mxu0 }
 0x17e   :  { %276 = vst [vmem:[#allocation5 + $0x28] sm:$0xff] %v420_v30  ;;  %v201_v31 = vpop.f32.mrb[5].mxu0 }
 0x17f   :  { %275 = vst [vmem:[#allocation5 + $0x20] sm:$0xff] %v201_v31 }
 0x185   :  { %v423_v32 = vpop.f32.mrb[6].mxu0 }
 0x186   :  { %278 = vst [vmem:[#allocation5 + $0x38] sm:$0xff] %v423_v32  ;;  %v211_v33 = vpop.f32.mrb[7].mxu0 }
 0x187   :  { %277 = vst [vmem:[#allocation5 + $0x30] sm:$0xff] %v211_v33 }
 0x18d   :  { %v426_v34 = vpop.f32.mrb[0].mxu1 }
 0x18e   :  { %280 = vst [vmem:[#allocation5 + $0x48] sm:$0xff] %v426_v34  ;;  %v221_v35 = vpop.f32.mrb[1].mxu1 }
 0x18f   :  { %279 = vst [vmem:[#allocation5 + $0x40] sm:$0xff] %v221_v35 }
 0x195   :  { %v429_v36 = vpop.f32.mrb[2].mxu1 }
 0x196   :  { %282 = vst [vmem:[#allocation5 + $0x58] sm:$0xff] %v429_v36  ;;  %v231_v37 = vpop.f32.mrb[3].mxu1 }
 0x197   :  { %281 = vst [vmem:[#allocation5 + $0x50] sm:$0xff] %v231_v37 }
 0x19d   :  { %v432_v38 = vpop.f32.mrb[4].mxu1 }
 0x19e   :  { %284 = vst [vmem:[#allocation5 + $0x68] sm:$0xff] %v432_v38  ;;  %v241_v39 = vpop.f32.mrb[5].mxu1 }
 0x19f   :  { %283 = vst [vmem:[#allocation5 + $0x60] sm:$0xff] %v241_v39 }
 0x1a5   :  { %v435_v40 = vpop.f32.mrb[6].mxu1 }
 0x1a6   :  { %286 = vst [vmem:[#allocation5 + $0x78] sm:$0xff] %v435_v40  ;;  %v251_v41 = vpop.f32.mrb[7].mxu1 }
 0x1a7   :  { %285 = vst [vmem:[#allocation5 + $0x70] sm:$0xff] %v251_v41 }
 0x1a8   :  { %503 = shalt.err (!%p500_p6)
}
 0x1a9   :  { %s504_s11 = scalar_lea.hbm %s599_s1, 2048 }
 0x1aa   :  { %p505_p7 = scmp.ne.s32.totalorder %s599_s1, %s504_s11  ;;  %p508_p8 = scmp.lt.u32.totalorder %s504_s11, %s599_s1 }
 0x1ac   :  { %p510_p9 = pnand %p508_p8, %p505_p7 }
 0x1ae   :  { %513 = shalt.err (!%p510_p9)
}
 0x1af   :  { %354 = dma.vmem_to_hbm [thread:$0]  %s349_s7, 2048, %s599_s1, [#allocation4], %s521_s19, %s521_s19, %s522_s20  }
 0x1b0   :  { %516 = dma.done.wait [#allocation4], 2048  }
 0x1b1   :  { %517 = vsyncadd [#allocation4], 4294965248 }
 0x1b2   :  { %518 = dma.done.wait [#allocation7], 16  }
 0x1b3   :  { %519 = vsyncadd [#allocation7], 4294967280 }
 0x1b4   :  { %371 = vsyncpa [#allocation3], 1 }
 0x1b5   :  { %372 = vsyncpa [#allocation4], 1 }
 0x1b6   :  { %373 = vsyncpa [#allocation7], 1 }

</bundles_post_ra>
